<compile_context>
chip_gen: v7x
topology: tpu7x:2x2x1
jax: 0.10.0
libtpu: 0.0.40
codegen_flags: <defaults>
</compile_context>

<pallas_src>
import functools

import jax
import jax.numpy as jnp
from jax.experimental import pallas as pl
from jax.experimental.pallas import tpu as pltpu


def _round_up(x: int, m: int) -> int:
    return ((x + m - 1) // m) * m


def _cdiv(a: int, b: int) -> int:
    return -(-a // b)


def _pick_tile(dim: int, max_tile: int, align: int) -> int:
    """Divisor-friendly tile: <= max_tile, `align`-aligned, minimizes padding."""
    n_tiles = _cdiv(dim, max_tile)
    return min(max_tile, _round_up(_cdiv(dim, n_tiles), align))


def _vmem_capacity_bytes() -> int:
    try:
        info = pltpu.get_tpu_info()
        cap = getattr(info, "vmem_capacity_bytes", None)
        if cap:
            return int(cap)
    except Exception:
        pass
    return 64 * 1024 * 1024  # conservative (v7x-sized VMEM) -> safe everywhere


def prepare_linear_params(weight, bias):
    """One-time layout prep, done OUTSIDE the per-call hot path.

    weight: [F_out, F_in] (PyTorch nn.Linear layout) -> [F_in, F_out] so the
    kernel's RHS contracts on its sublane dim (canonical MXU layout, no
    in-kernel transposes).  bias: [F_out] -> [1, F_out].
    """
    return jnp.asarray(weight).T, jnp.asarray(bias).reshape(1, -1)


# ----------------------------------------------------------------------------
# Kernels
# ----------------------------------------------------------------------------
def _linear_bias_single_kernel(x_ref, w_ref, b_ref, o_ref):
    # Whole problem in one VMEM tile: out = x @ w + b.
    acc = jnp.dot(x_ref[...].astype(w_ref.dtype), w_ref[...],
                  preferred_element_type=jnp.float32)
    o_ref[...] = (acc + b_ref[...].astype(jnp.float32)).astype(o_ref.dtype)


def _linear_bias_kernel(x_ref, w_ref, b_ref, o_ref):
    # x_ref: [tm, tk]   rows  x F_in slice
    # w_ref: [tk, tn]   F_in  x F_out slice (pre-transposed weight)
    # b_ref: [1,  tn]
    # o_ref: [tm, tn]   f32 output block; resident across the K grid axis,
    #                   used directly as the accumulator (no scratch needed).
    k = pl.program_id(2)

    @pl.when(k == 0)
    def _():
        # Fold the bias into the initialization instead of a finalize add.
        o_ref[...] = jnp.broadcast_to(b_ref[...].astype(o_ref.dtype), o_ref.shape)

    x = x_ref[...].astype(w_ref.dtype)  # no-op in f32; bf16 cast if W is bf16
    o_ref[...] += jnp.dot(x, w_ref[...],
                          preferred_element_type=jnp.float32).astype(o_ref.dtype)


# ----------------------------------------------------------------------------
# Wrapper
# ----------------------------------------------------------------------------
@functools.partial(
    jax.jit,
    static_argnames=("training", "dropout_p", "use_bf16_operands",
                     "block_m", "block_n", "block_k"))
def unimodal_embedding_forward(h, w_t, b2, rng_key=None, *, training=False,
                               dropout_p=0.0, use_bf16_operands=False,
                               block_m=None, block_n=None, block_k=None):
    """Pallas implementation of UniModalEmbeddingLayer.forward.

    h:   [N, F_in]       float32
    w_t: [F_in, F_out]   pre-transposed weight (see prepare_linear_params)
    b2:  [1, F_out]      bias
    """
    n, f_in = h.shape
    f_in_w, f_out = w_t.shape
    assert f_in_w == f_in, "weight / input feature mismatch"
    out_dtype = jnp.float32

    # --- generation-aware tile / VMEM budget ---------------------------------
    vmem_cap = _vmem_capacity_bytes()
    if vmem_cap >= 96 * 1024 * 1024:          # v5e / v6e: 128 MiB VMEM, 1 TC
        tm_d, tn_d, tk_d = 512, 512, 1024
        budget_cap = 64 * 1024 * 1024
        split_for_two_cores = False
    else:                                     # v7x: 64 MiB VMEM, 2 TCs
        tm_d, tn_d, tk_d = 256, 256, 512
        budget_cap = 32 * 1024 * 1024
        split_for_two_cores = True
    tm_max = block_m or tm_d
    tn_max = block_n or tn_d
    tk_max = block_k or tk_d

    w_use = w_t.astype(jnp.bfloat16) if use_bf16_operands else w_t

    if n <= tm_max and f_out <= tn_max and f_in <= tk_max:
        # --- single-block fast path: no padding, no grid, no slicing ---------
        out = pl.pallas_call(
            _linear_bias_single_kernel,
            out_shape=jax.ShapeDtypeStruct((n, f_out), out_dtype),
        )(h, w_use, b2)
    else:
        # --- tiled, pipelined path -------------------------------------------
        tm = _pick_tile(n, tm_max, 8)
        tn = _pick_tile(f_out, tn_max, 128)
        tk = _pick_tile(f_in, tk_max, 128)

        n_pad = _round_up(n, tm)
        f_out_pad = _round_up(f_out, tn)
        f_in_pad = _round_up(f_in, tk)

        # v7x: make sure at least one 'parallel' grid axis has extent >= 2 so
        # both TensorCores get work (no effect on single-TC v5e/v6e).
        if split_for_two_cores and (n_pad // tm) * (f_out_pad // tn) == 1:
            if tm >= 16:
                tm = _round_up(tm // 2, 8)
                n_pad = _round_up(n, tm)
            elif tn >= 256:
                tn = _round_up(tn // 2, 128)
                f_out_pad = _round_up(f_out, tn)

        # Zero padding: padded F_in columns contribute 0 to the dot product;
        # padded rows / output columns are sliced off below.  (For a fixed
        # deployment, hoist the constant-weight pad out of the per-call path
        # alongside the one-time transpose.)
        h_p = jnp.pad(h, ((0, n_pad - n), (0, f_in_pad - f_in)))
        w_p = jnp.pad(w_use, ((0, f_in_pad - f_in), (0, f_out_pad - f_out)))
        b_p = jnp.pad(b2, ((0, 0), (0, f_out_pad - f_out)))

        grid = (n_pad // tm, f_out_pad // tn, f_in_pad // tk)

        w_elem = 2 if use_bf16_operands else 4
        buffered = (2 * tm * tk * 4          # x blocks (double-buffered)
                    + 2 * tk * tn * w_elem   # w blocks
                    + 2 * tm * tn * 4        # out/accumulator blocks
                    + 2 * tn * 4)            # bias blocks
        vmem_limit = int(min(budget_cap, max(16 * 1024 * 1024, 2 * buffered)))

        cost = pl.CostEstimate(
            flops=2 * n_pad * f_in_pad * f_out_pad,
            transcendentals=0,
            bytes_accessed=(4 * n_pad * f_in_pad
                            + w_elem * f_in_pad * f_out_pad * (n_pad // tm)
                            + 4 * n_pad * f_out_pad
                            + 4 * f_out_pad))

        out_padded = pl.pallas_call(
            _linear_bias_kernel,
            out_shape=jax.ShapeDtypeStruct((n_pad, f_out_pad), out_dtype),
            grid_spec=pltpu.PrefetchScalarGridSpec(
                num_scalar_prefetch=0,
                grid=grid,
                in_specs=[
                    pl.BlockSpec((tm, tk), lambda i, j, k: (i, k)),
                    pl.BlockSpec((tk, tn), lambda i, j, k: (k, j)),
                    pl.BlockSpec((1, tn), lambda i, j, k: (0, j)),
                ],
                out_specs=pl.BlockSpec((tm, tn), lambda i, j, k: (i, j)),
            ),
            compiler_params=pltpu.CompilerParams(
                dimension_semantics=("parallel", "parallel", "arbitrary"),
                vmem_limit_bytes=vmem_limit,
            ),
            cost_estimate=cost,
        )(h_p, w_p, b_p)

        out = out_padded[:n, :f_out]

    # Dropout is only applied on the batch>1 branch, and only in training
    # (identity in eval mode, matching the PyTorch module).
    if training and dropout_p > 0.0 and n > 1:
        if rng_key is None:
            raise ValueError("training-mode dropout requires rng_key")
        # TODO(synk): fuse the dropout mask into the kernel finalize step with
        # pltpu.prng_random_bits if training throughput ever matters here.
        keep = jax.random.bernoulli(rng_key, 1.0 - dropout_p, out.shape)
        out = jnp.where(keep, out / (1.0 - dropout_p), 0.0).astype(out.dtype)
    return out


def init_params(key, f_in, f_out):
    """Deterministic PyTorch-style nn.Linear init: U(-1/sqrt(f_in), 1/sqrt(f_in))."""
    k_w, k_b = jax.random.split(key)
    bound = 1.0 / jnp.sqrt(jnp.float32(f_in))
    weight = jax.random.uniform(k_w, (f_out, f_in), jnp.float32, -bound, bound)
    bias = jax.random.uniform(k_b, (f_out,), jnp.float32, -bound, bound)
    return weight, bias


if __name__ == "__main__":
    key = jax.random.PRNGKey(0)
    k_h, k_p, k_h1, k_big, k_pbig = jax.random.split(key, 5)

    # One node type with a single modality: input_sizes_dict = {"mod0": 64}
    batch, input_size, output_size = 8, 64, 32
    h = jax.random.normal(k_h, (batch, input_size), jnp.float32)
    weight, bias = init_params(k_p, input_size, output_size)     # PyTorch layout
    w_t, b2 = prepare_linear_params(weight, bias)                # one-time prep

    # Batch > 1 branch (Linear + eval-mode Dropout == Linear). Single-block path.
    out = jax.block_until_ready(unimodal_embedding_forward(h, w_t, b2))
    ref = h @ weight.T + bias
    assert out.shape == (batch, output_size)
    assert jnp.allclose(out, ref, atol=1e-5, rtol=1e-5), "mismatch vs reference"

    # Batch == 1 branch (Linear only, no BatchNorm/Dropout path).
    h1 = jax.random.normal(k_h1, (1, input_size), jnp.float32)
    out1 = jax.block_until_ready(unimodal_embedding_forward(h1, w_t, b2))
    ref1 = h1 @ weight.T + bias
    assert out1.shape == (1, output_size)
    assert jnp.allclose(out1, ref1, atol=1e-5, rtol=1e-5), "mismatch (batch=1)"

    # Larger problem to exercise the tiled / padded / multi-grid path.
    n2, f_in2, f_out2 = 520, 256, 160
    h2 = jax.random.normal(k_big, (n2, f_in2), jnp.float32)
    w2, bias2 = init_params(k_pbig, f_in2, f_out2)
    w2_t, b2_2 = prepare_linear_params(w2, bias2)
    out2 = jax.block_until_ready(unimodal_embedding_forward(h2, w2_t, b2_2))
    ref2 = jnp.dot(h2, w2.T, precision=jax.lax.Precision.HIGHEST) + bias2
    assert out2.shape == (n2, f_out2)
    assert jnp.allclose(out2, ref2, atol=1e-4, rtol=1e-4), "mismatch (tiled path)"

    # Training-mode call (dropout active on the batch>1 branch): shape check.
    out_tr = jax.block_until_ready(
        unimodal_embedding_forward(h, w_t, b2, jax.random.PRNGKey(1),
                                   training=True, dropout_p=0.5))
    assert out_tr.shape == (batch, output_size)

    print("KERNEL_OK")
</pallas_src>

<mosaic_0001>
module attributes {stable_mosaic.version = 11 : i64} {
  func.func @_linear_bias_single_kernel(%arg0: memref<8x64xf32, #tpu.memory_space<vmem>>, %arg1: memref<64x32xf32, #tpu.memory_space<vmem>>, %arg2: memref<1x32xf32, #tpu.memory_space<vmem>>, %arg3: memref<8x32xf32, #tpu.memory_space<vmem>>) attributes {dimension_semantics = [], scalar_prefetch = 0 : i64, scratch_operands = 0 : i64, tpu.core_type = #tpu.core_type<tc>} {
    %c0 = arith.constant 0 : index
    %c0_0 = arith.constant 0 : index
    %0 = vector.load %arg0[%c0, %c0_0] : memref<8x64xf32, #tpu.memory_space<vmem>>, vector<8x64xf32>
    %c0_1 = arith.constant 0 : index
    %c0_2 = arith.constant 0 : index
    %1 = vector.load %arg1[%c0_1, %c0_2] : memref<64x32xf32, #tpu.memory_space<vmem>>, vector<64x32xf32>
    %cst = arith.constant dense<0.000000e+00> : vector<8x32xf32>
    %2 = tpu.matmul %0, %1, %cst {dimension_numbers = #tpu.dot_dimension_numbers<[1], [0], [0], [1], [0, 0, 1, 1], [], []>} : vector<8x64xf32>, vector<64x32xf32>, vector<8x32xf32> -> vector<8x32xf32>
    %c0_3 = arith.constant 0 : index
    %c0_4 = arith.constant 0 : index
    %3 = vector.load %arg2[%c0_3, %c0_4] : memref<1x32xf32, #tpu.memory_space<vmem>>, vector<1x32xf32>
    %4 = vector.broadcast %3 : vector<1x32xf32> to vector<8x32xf32>
    %5 = arith.addf %2, %4 : vector<8x32xf32>
    %c0_5 = arith.constant 0 : index
    %c0_6 = arith.constant 0 : index
    %6 = vector.load %arg3[%c0_5, %c0_6] : memref<8x32xf32, #tpu.memory_space<vmem>>, vector<8x32xf32>
    tpu.vector_store %arg3[%c0_5, %c0_6], %5 {strides = array<i32>} : memref<8x32xf32, #tpu.memory_space<vmem>>, vector<8x32xf32>,
    return
  }
}

</mosaic_0001>

<bundles_post_ra>
// kernel: unimodal_embedding_forward.1
= control target key start
LH: loop header
LB: loop body
LE: loop exit
PB: predicated region body
PF: predicated region fallthrough
CT: control target
= control target key end

     0   :  { %v191_v3 = vmov 0.0|0.0   ;;  %vm192_vm0 = vmmov 0   ;;  %v193_v6 = vmov 0.0   ;;  %s257_s0 = inlined_call_operand.vmem [shape: f32[8,64], index: 0, kind: input, shape index: {}]   ;;  %s258_s1 = inlined_call_operand.vmem [shape: f32[64,32], index: 1, kind: input, shape index: {}]   ;;  %s259_s2 = inlined_call_operand.vmem [shape: f32[1,32], index: 2, kind: input, shape index: {}]   ;;  %s260_s3 = inlined_call_operand.hbm [shape: f32[8,32], index: 3, kind: output, shape index: {}]  }
   0x1   :  { %v16_v0 = vld [vmem:[%s258_s1] sm:$0xff]  ;;  %v17_v1 = vld [vmem:[%s258_s1 + $0x8] sm:$0xff]  ;;  %v18_v2 = vld [vmem:[%s258_s1 + $0x10] sm:$0xff]  ;;  %151 = vmatprep.subr.bf16.mxu0 %v191_v3  ;;  %148 = vmatprep.mubr.msk.f32.mxu0 %vm192_vm0, %v193_v6 }
   0x2   :  { %v152_v4 = vpack.c.bf16 %v17_v1, %v16_v0  ;;  %v19_v5 = vld [vmem:[%s258_s1 + $0x18] sm:$0xff] }
   0x3   :  { %v155_v7 = vpack.c.bf16 %v19_v5, %v18_v2 }
   0x4   :  { %153 = vmatpush3.bf16.msra.mxu0 %v152_v4 }
   0x5   :  { %8 = vsyncpa [#allocation3], 0  ;;  %154 = vmatprep.subr.bf16.mxu0 %v191_v3  ;;  %v20_v8 = vld [vmem:[%s258_s1 + $0x20] sm:$0xff]  ;;  %v21_v9 = vld [vmem:[%s258_s1 + $0x28] sm:$0xff]  ;;  %vm31_vm1 = vcmask 523264   ;;  %s194_s5 = smov [#allocation2]  }
   0x6   :  { %v158_v10 = vpack.c.bf16 %v21_v9, %v20_v8  ;;  %v22_v11 = vld [vmem:[%s258_s1 + $0x30] sm:$0xff]  ;;  %v23_v12 = vld [vmem:[%s258_s1 + $0x38] sm:$0xff]  ;;  %v15_v14 = vld [vmem:[%s257_s0] sm:$0xff]  ;;  %s113_s6 = sshll.u32 %s194_s5, 4  ;;  %vm105_vm2 = vcmask 261120   ;;  %s114_s6 = int_to_ptr.vmem [resolvable:$true] %s113_s6 }
   0x7   :  { %v161_v13 = vpack.c.bf16 %v23_v12, %v22_v11  ;;  %v121_v15 = vld [vmem:[%s259_s2] ss:$0 sm:$0xff]  ;;  %s167_s1 = scalar_lea.vmem %s114_s6, 128  ;;  %p172_p1 = scmp.lt.s32.totalorder %s114_s6, %s114_s6 }
   0x8   :  { %156 = vmatpush3.bf16.msra.mxu0 %v155_v7  ;;  %p168_p0 = scmp.ne.s32.totalorder %s114_s6, %s167_s1  ;;  %p173_p2 = scmp.lt.s32.totalorder %s167_s1, %s167_s1 }
   0x9   :  { %157 = vmatprep.subr.bf16.mxu0 %v191_v3 }
   0xa   :  { %p174_p3 = por %p173_p2, %p172_p1 }
   0xc   :  { %159 = vmatpush3.bf16.msra.mxu0 %v158_v10  ;;  %p175_p4 = pnand %p174_p3, %p168_p0 }
   0xd   :  { %160 = vmatprep.subr.bf16.mxu0 %v191_v3 }
  0x10   :  { %162 = vmatpush3.bf16.msra.mxu0 %v161_v13 }
  0x13   :  { %149 = vmatmul.mubr.msk.f32.vlgmr.msra.gmra.mrb[0].mxu0 %vm31_vm1, %v15_v14 }
  0xe6   :  { %v101_v16 = vpop.f32.mrb[0].mxu0 }
  0xe7   :  { %v102_v17 = vadd.f32 %v121_v15, %v101_v16  ;;  %v150_v18 = vpop.f32.mrb[1].mxu0 }
  0xe9   :  { %106 = vst.msk [vmem:[#allocation2] sm:$0xff] %vm105_vm2, %v102_v17 }
  0xea   :  { %178 = shalt.err (!%p175_p4)
}
  0xeb   :  { %s179_s8 = scalar_lea.hbm %s260_s3, 128 }
  0xec   :  { %p180_p5 = scmp.ne.s32.totalorder %s260_s3, %s179_s8  ;;  %p183_p6 = scmp.lt.u32.totalorder %s179_s8, %s260_s3 }
  0xee   :  { %p185_p7 = pnand %p183_p6, %p180_p5 }
  0xf0   :  { %188 = shalt.err (!%p185_p7)
}
  0xf1   :  { %116 = dma.vmem_to_hbm [thread:$0]  %s114_s6, 128, %s260_s3, [#allocation3]  }
  0xf2   :  { %189 = dma.done.wait [#allocation3], 128  }
  0xf3   :  { %190 = vsyncadd [#allocation3], 4294967168 }
  0xf4   :  { %120 = vsyncpa [#allocation3], 1 }

</bundles_post_ra>
